<compile_context>
chip_gen: v7x
topology: tpu7x:2x2x1
jax: 0.10.0
libtpu: 0.0.40
codegen_flags: <defaults>
</compile_context>

<pallas_src>
import functools

import jax
import jax.numpy as jnp
from jax.experimental import pallas as pl
from jax.experimental.pallas import tpu as pltpu


def _attn_kernel(*refs, dropout_p, matmul_dtype):
    if dropout_p > 0.0:
        seed_ref, scale_ref, q_ref, k_ref, v_ref, o_ref = refs
    else:
        scale_ref, q_ref, k_ref, v_ref, o_ref = refs
        seed_ref = None

    inv_scale = scale_ref[0]              # SMEM scalar
    r = 1.0 / inv_scale                   # one scalar reciprocal

    # Scale q (b, S, D) once instead of dividing the (b, S, S) score tensor.
    q = q_ref[...].astype(jnp.float32) * r
    k = k_ref[...]
    v = v_ref[...]

    # scores = (q / inv_scale) @ k^T, batched over the head-tile axis (MXU).
    s = jnp.einsum("bqd,bkd->bqk",
                   q.astype(matmul_dtype), k.astype(matmul_dtype),
                   preferred_element_type=jnp.float32)

    # Numerically-stable softmax along the last axis (exact divide for parity
    # with the PyTorch f32 reference; approx reciprocal caused the 4.8e-3 miss).
    m = jnp.max(s, axis=-1, keepdims=True)
    e = jnp.exp(s - m)
    denom = jnp.sum(e, axis=-1, keepdims=True)
    attn = e / denom

    # Inverted dropout; traced only when dropout_p > 0 (static specialization).
    if dropout_p > 0.0:
        pltpu.prng_seed(seed_ref[0] + pl.program_id(0))
        bits = pltpu.bitcast(pltpu.prng_random_bits(attn.shape), jnp.uint32)
        thresh = jnp.uint32(min(int(dropout_p * 4294967296.0), 4294967295))
        keep = bits >= thresh             # P(keep) = 1 - dropout_p
        attn = jnp.where(keep, attn, 0.0)

    out = jnp.einsum("bqk,bkd->bqd",
                     attn.astype(matmul_dtype), v.astype(matmul_dtype),
                     preferred_element_type=jnp.float32)
    if dropout_p > 0.0:
        # Keep-scale applied once on the (b, S, D) output (commutes with matmul).
        out = out * (1.0 / (1.0 - dropout_p))
    o_ref[...] = out.astype(o_ref.dtype)


@functools.partial(jax.jit,
                   static_argnames=("dropout_p", "bh_tile", "matmul_dtype"))
def sdp_attention(q, k, v, inv_scale_factor, seed=0, *, dropout_p=0.0,
                  bh_tile=None, matmul_dtype=jnp.float32):
    """q, k, v: (B, H, S, D) f32. inv_scale_factor: scalar. dropout_p: static."""
    B, H, S, D = q.shape
    BH = B * H
    if bh_tile is None:
        # Single grid step: at this problem size the kernel is overhead-bound,
        # so one step minimizes fixed per-step pipeline cost. Pass bh_tile=BH//2
        # explicitly to opt into a 2-way split across v7x's TensorCores.
        bh_tile = BH
    assert BH % bh_tile == 0

    qf = q.reshape(BH, S, D)
    kf = k.reshape(BH, S, D)
    vf = v.reshape(BH, S, D)

    scale_arr = jnp.asarray(inv_scale_factor, dtype=jnp.float32).reshape(1)

    dropout_p = float(dropout_p)
    kernel = functools.partial(_attn_kernel, dropout_p=dropout_p,
                               matmul_dtype=matmul_dtype)

    if dropout_p > 0.0:
        prefetch_args = (jnp.asarray([seed], dtype=jnp.int32), scale_arr)
    else:
        # No dropout -> no seed: drop the dead SMEM prefetch entirely.
        prefetch_args = (scale_arr,)

    grid_spec = pltpu.PrefetchScalarGridSpec(
        num_scalar_prefetch=len(prefetch_args),
        grid=(BH // bh_tile,),
        in_specs=[
            pl.BlockSpec((bh_tile, S, D), lambda i, *_: (i, 0, 0)),
            pl.BlockSpec((bh_tile, S, D), lambda i, *_: (i, 0, 0)),
            pl.BlockSpec((bh_tile, S, D), lambda i, *_: (i, 0, 0)),
        ],
        out_specs=pl.BlockSpec((bh_tile, S, D), lambda i, *_: (i, 0, 0)),
    )

    out = pl.pallas_call(
        kernel,
        grid_spec=grid_spec,
        out_shape=jax.ShapeDtypeStruct((BH, S, D), jnp.float32),
        compiler_params=pltpu.CompilerParams(
            dimension_semantics=("parallel",)),
    )(*prefetch_args, qf, kf, vf)

    return out.reshape(B, H, S, D)


def _reference(q, k, v, inv_scale_factor):
    qk = jnp.einsum("bhqd,bhkd->bhqk", q, k)
    attn = jax.nn.softmax(qk / inv_scale_factor, axis=-1)
    return jnp.einsum("bhqk,bhkd->bhqd", attn, v)


if __name__ == "__main__":
    key = jax.random.PRNGKey(0)
    kq, kk, kv, ks = jax.random.split(key, 4)

    # Small shapes consistent with the module's (B, H, S, D) structure.
    B, H, S, D = 1, 8, 32, 32
    q = jax.random.normal(kq, (B, H, S, D), dtype=jnp.float32)
    k = jax.random.normal(kk, (B, H, S, D), dtype=jnp.float32)
    v = jax.random.normal(kv, (B, H, S, D), dtype=jnp.float32)

    inv_scale_factor = float(jax.random.normal(ks, ()) + 4.0)  # nonzero scalar
    # dropout_p is a random tensor in the original module; use 0.0 here so the
    # result is deterministic and checkable against the reference.
    dropout_p = 0.0

    out = sdp_attention(q, k, v, inv_scale_factor, seed=0, dropout_p=dropout_p)
    out = jax.block_until_ready(out)

    ref = _reference(q, k, v, inv_scale_factor)
    assert out.shape == (B, H, S, D)
    assert jnp.allclose(out, ref, atol=2e-3, rtol=2e-3), float(
        jnp.max(jnp.abs(out - ref)))

    print("KERNEL_OK")
</pallas_src>

<mosaic_0001>
module attributes {stable_mosaic.version = 11 : i64} {
  func.func @_attn_kernel(%arg0: i32, %arg1: memref<1xf32, #tpu.memory_space<smem>>, %arg2: memref<8x32x32xf32, #tpu.memory_space<vmem>>, %arg3: memref<8x32x32xf32, #tpu.memory_space<vmem>>, %arg4: memref<8x32x32xf32, #tpu.memory_space<vmem>>, %arg5: memref<8x32x32xf32, #tpu.memory_space<vmem>>) attributes {dimension_semantics = [#tpu.dimension_semantics<parallel>], iteration_bounds = array<i64: 1>, scalar_prefetch = 1 : i64, scratch_operands = 0 : i64, tpu.core_type = #tpu.core_type<tc>, window_params = [{transform_indices = @transform_0, window_bounds = array<i64: 8, 32, 32>}, {transform_indices = @transform_1, window_bounds = array<i64: 8, 32, 32>}, {transform_indices = @transform_2, window_bounds = array<i64: 8, 32, 32>}, {transform_indices = @transform_3, window_bounds = array<i64: 8, 32, 32>}]} {
    %c0 = arith.constant 0 : index
    %0 = memref.load %arg1[%c0] : memref<1xf32, #tpu.memory_space<smem>>
    %cst = arith.constant 1.000000e+00 : f32
    %1 = arith.divf %cst, %0 : f32
    %c0_0 = arith.constant 0 : index
    %c0_1 = arith.constant 0 : index
    %c0_2 = arith.constant 0 : index
    %2 = vector.load %arg2[%c0_0, %c0_1, %c0_2] : memref<8x32x32xf32, #tpu.memory_space<vmem>>, vector<8x32x32xf32>
    %3 = vector.broadcast %1 : f32 to vector<8x32x32xf32>
    %4 = arith.mulf %2, %3 : vector<8x32x32xf32>
    %c0_3 = arith.constant 0 : index
    %c0_4 = arith.constant 0 : index
    %c0_5 = arith.constant 0 : index
    %5 = vector.load %arg3[%c0_3, %c0_4, %c0_5] : memref<8x32x32xf32, #tpu.memory_space<vmem>>, vector<8x32x32xf32>
    %c0_6 = arith.constant 0 : index
    %c0_7 = arith.constant 0 : index
    %c0_8 = arith.constant 0 : index
    %6 = vector.load %arg4[%c0_6, %c0_7, %c0_8] : memref<8x32x32xf32, #tpu.memory_space<vmem>>, vector<8x32x32xf32>
    "tpu.trace_start"() <{level = 10 : i32, message = "bqd,bkd->bqk"}> : () -> ()
    %cst_9 = arith.constant dense<0.000000e+00> : vector<8x32x32xf32>
    %7 = tpu.matmul %4, %5, %cst_9 {dimension_numbers = #tpu.dot_dimension_numbers<[2], [2], [1], [1], [0, 0, 0, 1, 1, 1], [0], [0]>} : vector<8x32x32xf32>, vector<8x32x32xf32>, vector<8x32x32xf32> -> vector<8x32x32xf32>
    "tpu.trace_stop"() : () -> ()
    %cst_10 = arith.constant dense<0xFF800000> : vector<8x32xf32>
    %8 = vector.multi_reduction <maximumf>, %7, %cst_10 [2] : vector<8x32x32xf32> to vector<8x32xf32>
    %9 = vector.shape_cast %8 : vector<8x32xf32> to vector<8x32x1xf32>
    %10 = vector.broadcast %9 : vector<8x32x1xf32> to vector<8x32x32xf32>
    %11 = arith.subf %7, %10 : vector<8x32x32xf32>
    %12 = math.exp %11 : vector<8x32x32xf32>
    %cst_11 = arith.constant dense<0.000000e+00> : vector<8x32xf32>
    %13 = vector.multi_reduction <add>, %12, %cst_11 [2] : vector<8x32x32xf32> to vector<8x32xf32>
    %14 = vector.shape_cast %13 : vector<8x32xf32> to vector<8x32x1xf32>
    %15 = vector.broadcast %14 : vector<8x32x1xf32> to vector<8x32x32xf32>
    %16 = arith.divf %12, %15 : vector<8x32x32xf32>
    "tpu.trace_start"() <{level = 10 : i32, message = "bqk,bkd->bqd"}> : () -> ()
    %cst_12 = arith.constant dense<0.000000e+00> : vector<8x32x32xf32>
    %17 = tpu.matmul %16, %6, %cst_12 {dimension_numbers = #tpu.dot_dimension_numbers<[2], [1], [1], [2], [0, 0, 0, 1, 1, 2], [0], [0]>} : vector<8x32x32xf32>, vector<8x32x32xf32>, vector<8x32x32xf32> -> vector<8x32x32xf32>
    "tpu.trace_stop"() : () -> ()
    %c0_13 = arith.constant 0 : index
    %c0_14 = arith.constant 0 : index
    %c0_15 = arith.constant 0 : index
    %18 = vector.load %arg5[%c0_13, %c0_14, %c0_15] : memref<8x32x32xf32, #tpu.memory_space<vmem>>, vector<8x32x32xf32>
    tpu.vector_store %arg5[%c0_13, %c0_14, %c0_15], %17 {strides = array<i32>} : memref<8x32x32xf32, #tpu.memory_space<vmem>>, vector<8x32x32xf32>,
    return
  }
  func.func @transform_0(%arg0: i32, %arg1: memref<1xf32, #tpu.memory_space<smem>>) -> (i32, i32, i32) {
    %c0_i32 = arith.constant 0 : i32
    %c0_i32_0 = arith.constant 0 : i32
    %c0_i32_1 = arith.constant 0 : i32
    return %arg0, %c0_i32, %c0_i32_0 : i32, i32, i32
  }
  func.func @transform_1(%arg0: i32, %arg1: memref<1xf32, #tpu.memory_space<smem>>) -> (i32, i32, i32) {
    %c0_i32 = arith.constant 0 : i32
    %c0_i32_0 = arith.constant 0 : i32
    %c0_i32_1 = arith.constant 0 : i32
    return %arg0, %c0_i32, %c0_i32_0 : i32, i32, i32
  }
  func.func @transform_2(%arg0: i32, %arg1: memref<1xf32, #tpu.memory_space<smem>>) -> (i32, i32, i32) {
    %c0_i32 = arith.constant 0 : i32
    %c0_i32_0 = arith.constant 0 : i32
    %c0_i32_1 = arith.constant 0 : i32
    return %arg0, %c0_i32, %c0_i32_0 : i32, i32, i32
  }
  func.func @transform_3(%arg0: i32, %arg1: memref<1xf32, #tpu.memory_space<smem>>) -> (i32, i32, i32) {
    %c0_i32 = arith.constant 0 : i32
    %c0_i32_0 = arith.constant 0 : i32
    %c0_i32_1 = arith.constant 0 : i32
    return %arg0, %c0_i32, %c0_i32_0 : i32, i32, i32
  }
}

</mosaic_0001>

<bundles_post_ra>
// kernel: sdp_attention.1
= control target key start
LH: loop header
LB: loop body
LE: loop exit
PB: predicated region body
PF: predicated region fallthrough
CT: control target
= control target key end

     0   :  { %10 = vsyncpa [#allocation5], 0  ;;  %s3711_s0 = inlined_call_operand.<no memory space> [shape: f32[1], index: 0, kind: input, shape index: {}]   ;;  %s3712_s1 = inlined_call_operand.hbm [shape: f32[8,32,32], index: 1, kind: input, shape index: {}]   ;;  %s3713_s2 = inlined_call_operand.hbm [shape: f32[8,32,32], index: 2, kind: input, shape index: {}]   ;;  %s3714_s3 = inlined_call_operand.hbm [shape: f32[8,32,32], index: 3, kind: input, shape index: {}]   ;;  %s3715_s4 = inlined_call_operand.hbm [shape: f32[8,32,32], index: 4, kind: output, shape index: {}]  }
   0x1   :  { %11 = vsyncpa [#allocation8], 0 }
   0x2   :  { %12 = vsyncpa [#allocation6], 0  ;;  %s3082_s15 = smov [#allocation7]   ;;  %s3083_s17 = smov [#allocation4]  }
   0x3   :  { %s30_s16 = sshll.u32 %s3082_s15, 4  ;;  %s18_s18 = sshll.u32 %s3083_s17, 4  ;;  %s31_s16 = int_to_ptr.vmem [resolvable:$true] %s30_s16  ;;  %s3113_s18 = int_to_ptr.vmem [resolvable:$true] %s18_s18 }
   0x4   :  { %s2988_s21 = scalar_lea.hbm %s3713_s2, 4096 }
   0x5   :  { %p2989_p0 = scmp.ne.s32.totalorder %s3713_s2, %s2988_s21  ;;  %p2992_p1 = scmp.lt.u32.totalorder %s2988_s21, %s3713_s2 }
   0x7   :  { %p2994_p2 = pnand %p2992_p1, %p2989_p0 }
   0x9   :  { %2997 = shalt.err (!%p2994_p2)
}
   0xa   :  { %s2998_s26 = scalar_lea.vmem %s31_s16, 4096  ;;  %p3003_p4 = scmp.lt.s32.totalorder %s31_s16, %s31_s16 }
   0xb   :  { %p2999_p3 = scmp.ne.s32.totalorder %s31_s16, %s2998_s26  ;;  %p3004_p5 = scmp.lt.s32.totalorder %s2998_s26, %s2998_s26 }
   0xd   :  { %p3005_p6 = por %p3004_p5, %p3003_p4 }
   0xf   :  { %p3006_p7 = pnand %p3005_p6, %p2999_p3 }
  0x11   :  { %3009 = shalt.err (!%p3006_p7)
}
  0x12   :  { %s3084_s27 = smov 128   ;;  %s3085_s28 = smov 8  }
  0x13   :  { %36 = dma.hbm_to_vmem [thread:$0]  %s3713_s2, 4096, %s31_s16, [#allocation8], %s3084_s27, %s3084_s27, %s3085_s28  }
  0x14   :  { %s3010_s7 = scalar_lea.hbm %s3712_s1, 4096 }
  0x15   :  { %p3011_p8 = scmp.ne.s32.totalorder %s3712_s1, %s3010_s7  ;;  %p3014_p9 = scmp.lt.u32.totalorder %s3010_s7, %s3712_s1 }
  0x17   :  { %p3016_p10 = pnand %p3014_p9, %p3011_p8 }
  0x19   :  { %3019 = shalt.err (!%p3016_p10)
}
  0x1a   :  { %s3020_s12 = scalar_lea.vmem %s3113_s18, 4096  ;;  %p3025_p12 = scmp.lt.s32.totalorder %s3113_s18, %s3113_s18 }
  0x1b   :  { %p3021_p11 = scmp.ne.s32.totalorder %s3113_s18, %s3020_s12  ;;  %p3026_p13 = scmp.lt.s32.totalorder %s3020_s12, %s3020_s12 }
  0x1d   :  { %p3027_p0 = por %p3026_p13, %p3025_p12 }
  0x1f   :  { %p3028_p1 = pnand %p3027_p0, %p3021_p11 }
  0x21   :  { %3031 = shalt.err (!%p3028_p1)
}
  0x22   :  { %24 = dma.hbm_to_vmem [thread:$0]  %s3712_s1, 4096, %s3113_s18, [#allocation5], %s3084_s27, %s3084_s27, %s3085_s28  }
  0x23   :  { %s3086_s14 = smov [#allocation9]   ;;  %s3032_s19 = scalar_lea.hbm %s3714_s3, 4096 }
  0x24   :  { %s42_s15 = sshll.u32 %s3086_s14, 4  ;;  %p3033_p2 = scmp.ne.s32.totalorder %s3714_s3, %s3032_s19  ;;  %s43_s15 = int_to_ptr.vmem [resolvable:$true] %s42_s15 }
  0x25   :  { %p3036_p3 = scmp.lt.u32.totalorder %s3032_s19, %s3714_s3 }
  0x27   :  { %p3038_p4 = pnand %p3036_p3, %p3033_p2 }
  0x29   :  { %3041 = shalt.err (!%p3038_p4)
}
  0x2a   :  { %s3042_s24 = scalar_lea.vmem %s43_s15, 4096  ;;  %p3047_p6 = scmp.lt.s32.totalorder %s43_s15, %s43_s15 }
  0x2b   :  { %p3043_p5 = scmp.ne.s32.totalorder %s43_s15, %s3042_s24  ;;  %p3048_p7 = scmp.lt.s32.totalorder %s3042_s24, %s3042_s24 }
  0x2d   :  { %p3049_p8 = por %p3048_p7, %p3047_p6 }
  0x2f   :  { %p3050_p9 = pnand %p3049_p8, %p3043_p5 }
  0x31   :  { %3053 = shalt.err (!%p3050_p9)
}
  0x32   :  { %48 = dma.hbm_to_vmem [thread:$0]  %s3714_s3, 4096, %s43_s15, [#allocation8], %s3084_s27, %s3084_s27, %s3085_s28  }
  0x33   :  { %3076 = dma.done.wait [#allocation5], 4096  }
  0x34   :  { %3077 = vsyncadd [#allocation5], 4294963200  ;;  %v59_v0 = vstv %s3711_s0 }
  0x35   :  { %3078 = dma.done.wait [#allocation8], 8192  }
  0x36   :  { %3079 = vsyncadd [#allocation8], 4294959104  ;;  %2858 = vrcp.f32 %v59_v0  ;;  %vm191_vm0 = vcmask 261120   ;;  %v127_v2 = vld [vmem:[#allocation7] sm:$0xff]  ;;  %v128_v3 = vld [vmem:[#allocation7 + $0x8] sm:$0xff]  ;;  %s3087_s3 = smov [#allocation10]  }
  0x37   :  { %vm3170_vm1 = vmpackc.low %vm191_vm0, %vm191_vm0  ;;  %v131_v4 = vld [vmem:[#allocation7 + $0x20] sm:$0xff]  ;;  %v2690_v5 = vpack.c.bf16 %v128_v3, %v127_v2  ;;  %v132_v6 = vld [vmem:[#allocation7 + $0x28] sm:$0xff]  ;;  %s2229_s29 = sshll.u32 %s3087_s3, 4  ;;  %s2230_s29 = int_to_ptr.vmem [resolvable:$true] %s2229_s29 }
  0x38   :  { %v129_v7 = vld [vmem:[#allocation7 + $0x10] sm:$0xff]  ;;  %v130_v8 = vld [vmem:[#allocation7 + $0x18] sm:$0xff]  ;;  %v2702_v9 = vpack.c.bf16 %v132_v6, %v131_v4  ;;  %v135_v15 = vld [vmem:[#allocation7 + $0x40] sm:$0xff]  ;;  %s3054_s30 = scalar_lea.vmem %s2230_s29, 4096  ;;  %p3059_p11 = scmp.lt.s32.totalorder %s2230_s29, %s2230_s29 }
  0x39   :  { %v2696_v10 = vpack.c.bf16 %v130_v8, %v129_v7  ;;  %v133_v11 = vld [vmem:[#allocation7 + $0x30] sm:$0xff]  ;;  %v134_v12 = vld [vmem:[#allocation7 + $0x38] sm:$0xff]  ;;  %2692 = vmatprep.subr.msk.bf16.mxu0 %vm3170_vm1, %v2690_v5  ;;  %v136_v16 = vld [vmem:[#allocation7 + $0x48] sm:$0xff]  ;;  %p3055_p10 = scmp.ne.s32.totalorder %s2230_s29, %s3054_s30  ;;  %p3060_p12 = scmp.lt.s32.totalorder %s3054_s30, %s3054_s30 }
  0x3a   :  { %v2708_v13 = vpack.c.bf16 %v134_v12, %v133_v11  ;;  %2704 = vmatprep.subr.msk.bf16.mxu1 %vm3170_vm1, %v2702_v9  ;;  %2695 = vmatpush3.bf16.xpose.msk.msra.mxu0 %vm3170_vm1, %v2690_v5  ;;  %v139_v17 = vld [vmem:[#allocation7 + $0x60] sm:$0xff]  ;;  %v140_v18 = vld [vmem:[#allocation7 + $0x68] sm:$0xff]  ;;  %v2714_v19 = vpack.c.bf16 %v136_v16, %v135_v15  ;;  %v137_v25 = vld [vmem:[#allocation7 + $0x50] sm:$0xff] }
  0x3b   :  { %2707 = vmatpush3.bf16.xpose.msk.msra.mxu1 %vm3170_vm1, %v2702_v9  ;;  %2698 = vmatprep.subr.msk.bf16.mxu0 %vm3170_vm1, %v2696_v10  ;;  %v2726_v20 = vpack.c.bf16 %v140_v18, %v139_v17  ;;  %v62_v21 = vld [vmem:[#allocation4] sm:$0xff]  ;;  %v63_v23 = vld [vmem:[#allocation4 + $0x8] sm:$0xff]  ;;  %v138_v27 = vld [vmem:[#allocation7 + $0x58] sm:$0xff]  ;;  %p3061_p13 = por %p3060_p12, %p3059_p11 }
  0x3c   :  { %2710 = vmatprep.subr.msk.bf16.mxu1 %vm3170_vm1, %v2708_v13  ;;  %v66_v22 = vld [vmem:[#allocation4 + $0x20] sm:$0xff]  ;;  %v67_v24 = vld [vmem:[#allocation4 + $0x28] sm:$0xff]  ;;  %v141_v28 = vld [vmem:[#allocation7 + $0x70] sm:$0xff]  ;;  %v2720_v38 = vpack.c.bf16 %v138_v27, %v137_v25 }
  0x3d   :  { %v142_v29 = vld [vmem:[#allocation7 + $0x78] sm:$0xff]  ;;  %v64_v34 = vld [vmem:[#allocation4 + $0x10] sm:$0xff]  ;;  %v70_v42 = vld [vmem:[#allocation4 + $0x40] sm:$0xff]  ;;  %p3062_p0 = pnand %p3061_p13, %p3055_p10 }
  0x3e   :  { %v68_v35 = vld [vmem:[#allocation4 + $0x30] sm:$0xff]  ;;  %v65_v36 = vld [vmem:[#allocation4 + $0x18] sm:$0xff]  ;;  %v2732_v39 = vpack.c.bf16 %v142_v29, %v141_v28  ;;  %v74_v43 = vld [vmem:[#allocation4 + $0x60] sm:$0xff] }
  0x3f   :  { %v69_v37 = vld [vmem:[#allocation4 + $0x38] sm:$0xff]  ;;  %v143_v46 = vld [vmem:[#allocation7 + $0x80] sm:$0xff]  ;;  %v144_v49 = vld [vmem:[#allocation7 + $0x88] sm:$0xff] }
  0x40   :  { %v2859_v14 = vpop.eup %2858  ;;  %v147_v50 = vld [vmem:[#allocation7 + $0xa0] sm:$0xff]  ;;  %v148_v51 = vld [vmem:[#allocation7 + $0xa8] sm:$0xff]  ;;  %v2738_v52 = vpack.c.bf16 %v144_v49, %v143_v46  ;;  %v72_v56 = vld [vmem:[#allocation4 + $0x50] sm:$0xff] }
  0x41   :  { %2850 = vpush %v2859_v14  ;;  %v2750_v53 = vpack.c.bf16 %v148_v51, %v147_v50  ;;  %v71_v54 = vld [vmem:[#allocation4 + $0x48] sm:$0xff]  ;;  %v76_v57 = vld [vmem:[#allocation4 + $0x70] sm:$0xff]  ;;  %v146_v59 = vld [vmem:[#allocation7 + $0x98] sm:$0xff] }
  0x42   :  { %2701 = vmatpush3.bf16.xpose.msk.msra.mxu0 %vm3170_vm1, %v2696_v10  ;;  %v75_v55 = vld [vmem:[#allocation4 + $0x68] sm:$0xff]  ;;  %v145_v58 = vld [vmem:[#allocation7 + $0x90] sm:$0xff]  ;;  %v150_v61 = vld [vmem:[#allocation7 + $0xb8] sm:$0xff] }
  0x43   :  { %2713 = vmatpush3.bf16.xpose.msk.msra.mxu1 %vm3170_vm1, %v2708_v13  ;;  %2716 = vmatprep.subr.msk.bf16.mxu0 %vm3170_vm1, %v2714_v19  ;;  %v149_v60 = vld [vmem:[#allocation7 + $0xb0] sm:$0xff]  ;;  %v73_v3 = vld [vmem:[#allocation4 + $0x58] sm:$0xff]  ;;  %v2744_v5 = vpack.c.bf16 %v146_v59, %v145_v58  ;;  %v78_v7 = vld [vmem:[#allocation4 + $0x80] sm:$0xff] }
  0x44   :  { %2728 = vmatprep.subr.msk.bf16.mxu1 %vm3170_vm1, %v2726_v20  ;;  %v77_v4 = vld [vmem:[#allocation4 + $0x78] sm:$0xff]  ;;  %v2756_v6 = vpack.c.bf16 %v150_v61, %v149_v60  ;;  %v82_v8 = vld [vmem:[#allocation4 + $0xa0] sm:$0xff]  ;;  %v152_v14 = vld [vmem:[#allocation7 + $0xc8] sm:$0xff] }
  0x45   :  { %v151_v13 = vld [vmem:[#allocation7 + $0xc0] sm:$0xff]  ;;  %v156_v16 = vld [vmem:[#allocation7 + $0xe8] sm:$0xff]  ;;  %v157_v25 = vld [vmem:[#allocation7 + $0xf0] sm:$0xff] }
  0x46   :  { %v155_v15 = vld [vmem:[#allocation7 + $0xe0] sm:$0xff]  ;;  %v2762_v17 = vpack.c.bf16 %v152_v14, %v151_v13  ;;  %v158_v27 = vld [vmem:[#allocation7 + $0xf8] sm:$0xff] }
  0x47   :  { %v2774_v18 = vpack.c.bf16 %v156_v16, %v155_v15  ;;  %v89_v50 = vld [vmem:[#allocation4 + $0xd8] sm:$0xff] }
  0x48   :  { %v93_v51 = vld [vmem:[#allocation4 + $0xf8] sm:$0xff] }
  0x72   :  { %s2851_s0 = spop %2850 }
  0x73   :  { %v3194_v26 = vstv %s2851_s0 }
  0x74   :  { %v95_v30 = vmul.f32 %v3194_v26, %v62_v21  ;;  %v99_v31 = vmul.f32 %v3194_v26, %v66_v22  ;;  %v96_v32 = vmul.f32 %v3194_v26, %v63_v23  ;;  %v100_v33 = vmul.f32 %v3194_v26, %v67_v24  ;;  %v80_v21 = vld [vmem:[#allocation4 + $0x90] sm:$0xff]  ;;  %v154_v24 = vld [vmem:[#allocation7 + $0xd8] sm:$0xff] }
  0x75   :  { %v97_v40 = vmul.f32 %v3194_v26, %v64_v34  ;;  %v101_v41 = vmul.f32 %v3194_v26, %v68_v35  ;;  %v98_v44 = vmul.f32 %v3194_v26, %v65_v36  ;;  %v102_v45 = vmul.f32 %v3194_v26, %v69_v37  ;;  %v84_v22 = vld [vmem:[#allocation4 + $0xb0] sm:$0xff]  ;;  %v86_v36 = vld [vmem:[#allocation4 + $0xc0] sm:$0xff] }
  0x76   :  { %2474 = vmatprep.mubr.msk.f32.mxu0 %vm191_vm0, %v95_v30  ;;  %2488 = vmatprep.mubr.msk.f32.mxu1 %vm191_vm0, %v99_v31  ;;  %v103_v47 = vmul.f32 %v3194_v26, %v70_v42  ;;  %v107_v48 = vmul.f32 %v3194_v26, %v74_v43  ;;  %v104_v62 = vmul.f32 %v3194_v26, %v71_v54  ;;  %v153_v23 = vld [vmem:[#allocation7 + $0xd0] sm:$0xff]  ;;  %v90_v37 = vld [vmem:[#allocation4 + $0xe0] sm:$0xff]  ;;  %v87_v42 = vld [vmem:[#allocation4 + $0xc8] sm:$0xff] }
  0x77   :  { %2475 = vmatmul.mubr.msk.f32.vlgmr.msra.gmra.mrb[0].mxu0 %vm191_vm0, %v96_v32  ;;  %2489 = vmatmul.mubr.msk.f32.vlgmr.msra.gmra.mrb[0].mxu1 %vm191_vm0, %v100_v33  ;;  %v108_v63 = vmul.f32 %v3194_v26, %v75_v55  ;;  %v105_v0 = vmul.f32 %v3194_v26, %v72_v56  ;;  %v109_v2 = vmul.f32 %v3194_v26, %v76_v57  ;;  %v81_v32 = vld [vmem:[#allocation4 + $0x98] sm:$0xff]  ;;  %v91_v43 = vld [vmem:[#allocation4 + $0xe8] sm:$0xff] }
  0x78   :  { %2719 = vmatpush3.bf16.xpose.msk.msra.mxu0 %vm3170_vm1, %v2714_v19  ;;  %2731 = vmatpush3.bf16.xpose.msk.msra.mxu1 %vm3170_vm1, %v2726_v20  ;;  %v106_v9 = vmul.f32 %v3194_v26, %v73_v3  ;;  %v110_v10 = vmul.f32 %v3194_v26, %v77_v4  ;;  %v111_v11 = vmul.f32 %v3194_v26, %v78_v7  ;;  %v79_v19 = vld [vmem:[#allocation4 + $0x88] sm:$0xff]  ;;  %v85_v33 = vld [vmem:[#allocation4 + $0xb8] sm:$0xff] }
  0x79   :  { %2477 = vmatprep.mubr.msk.f32.mxu0 %vm191_vm0, %v97_v40  ;;  %2491 = vmatprep.mubr.msk.f32.mxu1 %vm191_vm0, %v101_v41  ;;  %v115_v12 = vmul.f32 %v3194_v26, %v82_v8  ;;  %v83_v20 = vld [vmem:[#allocation4 + $0xa8] sm:$0xff]  ;;  %v112_v28 = vmul.f32 %v3194_v26, %v79_v19  ;;  %v113_v30 = vmul.f32 %v3194_v26, %v80_v21 }
  0x7a   :  { %2722 = vmatprep.subr.msk.bf16.mxu0 %vm3170_vm1, %v2720_v38  ;;  %2734 = vmatprep.subr.msk.bf16.mxu1 %vm3170_vm1, %v2732_v39  ;;  %v116_v29 = vmul.f32 %v3194_v26, %v83_v20  ;;  %v117_v31 = vmul.f32 %v3194_v26, %v84_v22  ;;  %v2768_v34 = vpack.c.bf16 %v154_v24, %v153_v23 }
  0x7b   :  { %2478 = vmatmul.mubr.msk.f32.gmra.mrb[2].mxu0 %vm191_vm0, %v98_v44  ;;  %2492 = vmatmul.mubr.msk.f32.gmra.mrb[2].mxu1 %vm191_vm0, %v102_v45  ;;  %v2780_v35 = vpack.c.bf16 %v158_v27, %v157_v25  ;;  %v119_v40 = vmul.f32 %v3194_v26, %v86_v36  ;;  %v123_v41 = vmul.f32 %v3194_v26, %v90_v37  ;;  %v88_v44 = vld [vmem:[#allocation4 + $0xd0] sm:$0xff] }
  0x7c   :  { %2502 = vmatprep.mubr.msk.f32.mxu0 %vm191_vm0, %v103_v47  ;;  %2516 = vmatprep.mubr.msk.f32.mxu1 %vm191_vm0, %v107_v48  ;;  %v92_v45 = vld [vmem:[#allocation4 + $0xf0] sm:$0xff]  ;;  %v120_v46 = vmul.f32 %v3194_v26, %v87_v42  ;;  %v124_v47 = vmul.f32 %v3194_v26, %v91_v43  ;;  %v121_v48 = vmul.f32 %v3194_v26, %v88_v44 }
  0x7d   :  { %v125_v49 = vmul.f32 %v3194_v26, %v92_v45  ;;  %v122_v1 = vmul.f32 %v3194_v26, %v89_v50 }
  0x80   :  { %2725 = vmatpush3.bf16.xpose.msk.msra.mxu0 %vm3170_vm1, %v2720_v38  ;;  %2737 = vmatpush3.bf16.xpose.msk.msra.mxu1 %vm3170_vm1, %v2732_v39  ;;  %v114_v38 = vmul.f32 %v3194_v26, %v81_v32  ;;  %v118_v39 = vmul.f32 %v3194_v26, %v85_v33 }
  0x81   :  { %2740 = vmatprep.subr.msk.bf16.mxu0 %vm3170_vm1, %v2738_v52  ;;  %2752 = vmatprep.subr.msk.bf16.mxu1 %vm3170_vm1, %v2750_v53 }
  0x87   :  { %2503 = vmatmul.mubr.msk.f32.vlgmr.msra.gmra.mrb[4].mxu0 %vm191_vm0, %v104_v62  ;;  %2517 = vmatmul.mubr.msk.f32.vlgmr.msra.gmra.mrb[4].mxu1 %vm191_vm0, %v108_v63 }
  0x88   :  { %2505 = vmatprep.mubr.msk.f32.mxu0 %vm191_vm0, %v105_v0  ;;  %2519 = vmatprep.mubr.msk.f32.mxu1 %vm191_vm0, %v109_v2 }
  0x89   :  { %2743 = vmatpush3.bf16.xpose.msk.msra.mxu0 %vm3170_vm1, %v2738_v52  ;;  %2755 = vmatpush3.bf16.xpose.msk.msra.mxu1 %vm3170_vm1, %v2750_v53  ;;  %v126_v52 = vmul.f32 %v3194_v26, %v93_v51 }
  0x8a   :  { %2746 = vmatprep.subr.msk.bf16.mxu0 %vm3170_vm1, %v2744_v5  ;;  %2758 = vmatprep.subr.msk.bf16.mxu1 %vm3170_vm1, %v2756_v6 }
  0x8b   :  { %2506 = vmatmul.mubr.msk.f32.gmra.mrb[6].mxu0 %vm191_vm0, %v106_v9  ;;  %2520 = vmatmul.mubr.msk.f32.gmra.mrb[6].mxu1 %vm191_vm0, %v110_v10 }
  0x8c   :  { %2530 = vmatprep.mubr.msk.f32.mxu0 %vm191_vm0, %v111_v11  ;;  %2544 = vmatprep.mubr.msk.f32.mxu1 %vm191_vm0, %v115_v12 }
  0x91   :  { %2749 = vmatpush3.bf16.xpose.msk.msra.mxu0 %vm3170_vm1, %v2744_v5  ;;  %2761 = vmatpush3.bf16.xpose.msk.msra.mxu1 %vm3170_vm1, %v2756_v6 }
  0x92   :  { %2764 = vmatprep.subr.msk.bf16.mxu0 %vm3170_vm1, %v2762_v17  ;;  %2776 = vmatprep.subr.msk.bf16.mxu1 %vm3170_vm1, %v2774_v18 }
  0x98   :  { %2531 = vmatmul.mubr.msk.f32.vlgmr.msra.gmra.mrb[8].mxu0 %vm191_vm0, %v112_v28  ;;  %2545 = vmatmul.mubr.msk.f32.vlgmr.msra.gmra.mrb[8].mxu1 %vm191_vm0, %v116_v29 }
  0x99   :  { %2533 = vmatprep.mubr.msk.f32.mxu0 %vm191_vm0, %v113_v30  ;;  %2547 = vmatprep.mubr.msk.f32.mxu1 %vm191_vm0, %v117_v31 }
  0x9a   :  { %2767 = vmatpush3.bf16.xpose.msk.msra.mxu0 %vm3170_vm1, %v2762_v17  ;;  %2779 = vmatpush3.bf16.xpose.msk.msra.mxu1 %vm3170_vm1, %v2774_v18 }
  0x9b   :  { %2770 = vmatprep.subr.msk.bf16.mxu0 %vm3170_vm1, %v2768_v34  ;;  %2782 = vmatprep.subr.msk.bf16.mxu1 %vm3170_vm1, %v2780_v35 }
  0x9c   :  { %2534 = vmatmul.mubr.msk.f32.gmra.mrb[10].mxu0 %vm191_vm0, %v114_v38  ;;  %2548 = vmatmul.mubr.msk.f32.gmra.mrb[10].mxu1 %vm191_vm0, %v118_v39 }
  0x9d   :  { %2558 = vmatprep.mubr.msk.f32.mxu0 %vm191_vm0, %v119_v40  ;;  %2572 = vmatprep.mubr.msk.f32.mxu1 %vm191_vm0, %v123_v41 }
  0xa2   :  { %2773 = vmatpush3.bf16.xpose.msk.msra.mxu0 %vm3170_vm1, %v2768_v34  ;;  %2785 = vmatpush3.bf16.xpose.msk.msra.mxu1 %vm3170_vm1, %v2780_v35 }
  0xa9   :  { %2559 = vmatmul.mubr.msk.f32.vlgmr.msra.gmra.mrb[12].mxu0 %vm191_vm0, %v120_v46  ;;  %2573 = vmatmul.mubr.msk.f32.vlgmr.msra.gmra.mrb[12].mxu1 %vm191_vm0, %v124_v47 }
  0xaa   :  { %2561 = vmatprep.mubr.msk.f32.mxu0 %vm191_vm0, %v121_v48  ;;  %2575 = vmatprep.mubr.msk.f32.mxu1 %vm191_vm0, %v125_v49 }
  0xad   :  { %2562 = vmatmul.mubr.msk.f32.gmra.mrb[14].mxu0 %vm191_vm0, %v122_v1  ;;  %2576 = vmatmul.mubr.msk.f32.gmra.mrb[14].mxu1 %vm191_vm0, %v126_v52 }
 0x14a   :  { %v3304_v53 = vpop.f32.mrb[0].mxu0  ;;  %v3306_v54 = vpop.f32.mrb[0].mxu1 }
 0x14b   :  { %v3308_v55 = vpop.f32.mrb[1].mxu0  ;;  %v3310_v56 = vpop.f32.mrb[1].mxu1  ;;  %v1067_v57 = vsel %vm191_vm0, %v3304_v53, -inf  ;;  %v1079_v62 = vsel %vm191_vm0, %v3306_v54, -inf }
 0x14c   :  { %1068 = vmax.xlane.f32.xlu1 %v1067_v57  ;;  %v1064_v58 = vsel %vm191_vm0, %v3308_v55, -inf  ;;  %v1076_v63 = vsel %vm191_vm0, %v3310_v56, -inf }
 0x14d   :  { %1065 = vmax.xlane.f32.xlu0 %v1064_v58 }
 0x14e   :  { %v3316_v26 = vpop.f32.mrb[2].mxu0  ;;  %v3318_v59 = vpop.f32.mrb[2].mxu1 }
 0x14f   :  { %v3320_v60 = vpop.f32.mrb[3].mxu0  ;;  %v3322_v61 = vpop.f32.mrb[3].mxu1  ;;  %v1085_v0 = vsel %vm191_vm0, %v3318_v59, -inf  ;;  %v1073_v2 = vsel %vm191_vm0, %v3316_v26, -inf }
 0x150   :  { %1080 = vmax.xlane.f32.xlu1 %v1079_v62  ;;  %v1082_v3 = vsel %vm191_vm0, %v3322_v61, -inf  ;;  %v1070_v4 = vsel %vm191_vm0, %v3320_v60, -inf }
 0x151   :  { %1077 = vmax.xlane.f32.xlu0 %v1076_v63 }
 0x154   :  { %1086 = vmax.xlane.f32.xlu1 %v1085_v0 }
 0x155   :  { %1074 = vmax.xlane.f32.xlu0 %v1073_v2 }
 0x158   :  { %1083 = vmax.xlane.f32.xlu1 %v1082_v3 }
 0x159   :  { %1071 = vmax.xlane.f32.xlu0 %v1070_v4 }
 0x15a   :  { %v3336_v5 = vpop.f32.mrb[4].mxu1  ;;  %v3338_v6 = vpop.f32.mrb[4].mxu0 }
 0x15b   :  { %v3340_v7 = vpop.f32.mrb[5].mxu0  ;;  %v3342_v8 = vpop.f32.mrb[5].mxu1  ;;  %v1103_v9 = vsel %vm191_vm0, %v3336_v5, -inf  ;;  %v1091_v10 = vsel %vm191_vm0, %v3338_v6, -inf }
 0x15c   :  { %1104 = vmax.xlane.f32.xlu1 %v1103_v9  ;;  %v1100_v15 = vsel %vm191_vm0, %v3342_v8, -inf  ;;  %v1088_v16 = vsel %vm191_vm0, %v3340_v7, -inf }
 0x15d   :  { %1092 = vmax.xlane.f32.xlu0 %v1091_v10 }
 0x15e   :  { %v3348_v11 = vpop.f32.mrb[6].mxu1  ;;  %v3350_v12 = vpop.f32.mrb[6].mxu0 }
 0x15f   :  { %v3352_v13 = vpop.f32.mrb[7].mxu0  ;;  %v3354_v14 = vpop.f32.mrb[7].mxu1  ;;  %v1109_v17 = vsel %vm191_vm0, %v3348_v11, -inf  ;;  %v1097_v18 = vsel %vm191_vm0, %v3350_v12, -inf }
 0x160   :  { %1101 = vmax.xlane.f32.xlu1 %v1100_v15  ;;  %v1106_v19 = vsel %vm191_vm0, %v3354_v14, -inf  ;;  %v1094_v20 = vsel %vm191_vm0, %v3352_v13, -inf }
 0x161   :  { %1089 = vmax.xlane.f32.xlu0 %v1088_v16 }
 0x164   :  { %1110 = vmax.xlane.f32.xlu1 %v1109_v17 }
 0x165   :  { %1098 = vmax.xlane.f32.xlu0 %v1097_v18 }
 0x168   :  { %1107 = vmax.xlane.f32.xlu1 %v1106_v19 }
 0x169   :  { %1095 = vmax.xlane.f32.xlu0 %v1094_v20 }
 0x16b   :  { %v3368_v21 = vpop.f32.mrb[8].mxu1  ;;  %v3370_v22 = vpop.f32.mrb[8].mxu0 }
 0x16c   :  { %v3372_v23 = vpop.f32.mrb[9].mxu0  ;;  %v3374_v24 = vpop.f32.mrb[9].mxu1  ;;  %v1127_v25 = vsel %vm191_vm0, %v3368_v21, -inf  ;;  %v1115_v27 = vsel %vm191_vm0, %v3370_v22, -inf }
 0x16d   :  { %1128 = vmax.xlane.f32.xlu1 %v1127_v25  ;;  %1116 = vmax.xlane.f32.xlu0 %v1115_v27  ;;  %v1124_v32 = vsel %vm191_vm0, %v3374_v24, -inf  ;;  %v1112_v33 = vsel %vm191_vm0, %v3372_v23, -inf }
 0x16f   :  { %v3380_v28 = vpop.f32.mrb[10].mxu1  ;;  %v3382_v29 = vpop.f32.mrb[10].mxu0 }
 0x170   :  { %v3384_v30 = vpop.f32.mrb[11].mxu0  ;;  %v3386_v31 = vpop.f32.mrb[11].mxu1  ;;  %v1133_v34 = vsel %vm191_vm0, %v3380_v28, -inf  ;;  %v1121_v35 = vsel %vm191_vm0, %v3382_v29, -inf }
 0x171   :  { %1125 = vmax.xlane.f32.xlu1 %v1124_v32  ;;  %1113 = vmax.xlane.f32.xlu0 %v1112_v33  ;;  %v1130_v36 = vsel %vm191_vm0, %v3386_v31, -inf  ;;  %v1118_v37 = vsel %vm191_vm0, %v3384_v30, -inf }
 0x175   :  { %1134 = vmax.xlane.f32.xlu1 %v1133_v34  ;;  %1122 = vmax.xlane.f32.xlu0 %v1121_v35 }
 0x179   :  { %1131 = vmax.xlane.f32.xlu1 %v1130_v36  ;;  %1119 = vmax.xlane.f32.xlu0 %v1118_v37 }
 0x17c   :  { %v3400_v38 = vpop.f32.mrb[12].mxu1  ;;  %v3402_v39 = vpop.f32.mrb[12].mxu0 }
 0x17d   :  { %v3404_v40 = vpop.f32.mrb[13].mxu0  ;;  %v3406_v41 = vpop.f32.mrb[13].mxu1  ;;  %v1151_v42 = vsel %vm191_vm0, %v3400_v38, -inf  ;;  %v1139_v43 = vsel %vm191_vm0, %v3402_v39, -inf }
 0x17e   :  { %1152 = vmax.xlane.f32.xlu1 %v1151_v42  ;;  %1140 = vmax.xlane.f32.xlu0 %v1139_v43  ;;  %v1148_v48 = vsel %vm191_vm0, %v3406_v41, -inf  ;;  %v1136_v49 = vsel %vm191_vm0, %v3404_v40, -inf }
 0x180   :  { %v3412_v44 = vpop.f32.mrb[14].mxu1  ;;  %v3414_v45 = vpop.f32.mrb[14].mxu0 }
 0x181   :  { %v3416_v46 = vpop.f32.mrb[15].mxu0  ;;  %v3418_v47 = vpop.f32.mrb[15].mxu1  ;;  %v1157_v1 = vsel %vm191_vm0, %v3412_v44, -inf  ;;  %v1145_v52 = vsel %vm191_vm0, %v3414_v45, -inf }
 0x182   :  { %1149 = vmax.xlane.f32.xlu1 %v1148_v48  ;;  %1137 = vmax.xlane.f32.xlu0 %v1136_v49  ;;  %v1154_v50 = vsel %vm191_vm0, %v3418_v47, -inf  ;;  %v1142_v51 = vsel %vm191_vm0, %v3416_v46, -inf }
 0x186   :  { %1155 = vmax.xlane.f32.xlu1 %v1154_v50  ;;  %1143 = vmax.xlane.f32.xlu0 %v1142_v51 }
 0x18a   :  { %1158 = vmax.xlane.f32.xlu1 %v1157_v1  ;;  %1146 = vmax.xlane.f32.xlu0 %v1145_v52 }
 0x1d9   :  { %v1069_v57 = vpop.xlane.xlu1 %1068 }
 0x1da   :  { %v1161_v58 = vsub.f32 %v3304_v53, %v1069_v57  ;;  %v1066_v62 = vpop.xlane.xlu0 %1065 }
 0x1db   :  { %v1160_v63 = vsub.f32 %v3308_v55, %v1066_v62 }
 0x1dc   :  { %v1194_v0 = vmul.f32 1.442695, %v1161_v58 }
 0x1dd   :  { %v1192_v2 = vmul.f32 1.442695, %v1160_v63  ;;  %v1081_v3 = vpop.xlane.xlu1 %1080 }
 0x1de   :  { %2860 = vpow2.f32 %v1194_v0  ;;  %v1165_v4 = vsub.f32 %v3306_v54, %v1081_v3  ;;  %v1078_v9 = vpop.xlane.xlu0 %1077 }
 0x1df   :  { %v1164_v10 = vsub.f32 %v3310_v56, %v1078_v9  ;;  %2862 = vpow2.f32 %v1192_v2 }
 0x1e0   :  { %v1202_v15 = vmul.f32 1.442695, %v1165_v4 }
 0x1e1   :  { %v1200_v16 = vmul.f32 1.442695, %v1164_v10  ;;  %v1087_v17 = vpop.xlane.xlu1 %1086 }
 0x1e2   :  { %2864 = vpow2.f32 %v1202_v15  ;;  %v1167_v18 = vsub.f32 %v3318_v59, %v1087_v17  ;;  %v1075_v53 = vpop.xlane.xlu0 %1074 }
 0x1e3   :  { %v1163_v19 = vsub.f32 %v3316_v26, %v1075_v53  ;;  %2866 = vpow2.f32 %v1200_v16 }
 0x1e4   :  { %v1206_v55 = vmul.f32 1.442695, %v1167_v18 }
 0x1e5   :  { %v1198_v20 = vmul.f32 1.442695, %v1163_v19  ;;  %v1084_v25 = vpop.xlane.xlu1 %1083 }
 0x1e6   :  { %v1166_v27 = vsub.f32 %v3322_v61, %v1084_v25  ;;  %v1072_v54 = vpop.xlane.xlu0 %1071 }
 0x1e7   :  { %2868 = vpow2.f32 %v1198_v20  ;;  %v1162_v56 = vsub.f32 %v3320_v60, %v1072_v54 }
 0x1e8   :  { %v3440_v32 = vpop.eup %2860  ;;  %2870 = vpow2.f32 %v1206_v55  ;;  %v1204_v33 = vmul.f32 1.442695, %v1166_v27 }
 0x1e9   :  { %v1196_v34 = vmul.f32 1.442695, %v1162_v56  ;;  %v1105_v35 = vpop.xlane.xlu1 %1104  ;;  %v1259_v59 = vsel %vm191_vm0, %v3440_v32, 0.0  ;;  %v3444_v26 = vpop.eup %2862 }
 0x1ea   :  { %v1173_v36 = vsub.f32 %v3336_v5, %v1105_v35  ;;  %v1093_v37 = vpop.xlane.xlu0 %1092  ;;  %1260 = vadd.xlane.f32.xlu0 %v1259_v59  ;;  %v1256_v50 = vsel %vm191_vm0, %v3444_v26, 0.0 }
 0x1eb   :  { %2872 = vpow2.f32 %v1196_v34  ;;  %v1169_v61 = vsub.f32 %v3338_v6, %v1093_v37 }
 0x1ec   :  { %v3448_v42 = vpop.eup %2864  ;;  %2874 = vpow2.f32 %v1204_v33  ;;  %v1218_v60 = vmul.f32 1.442695, %v1173_v36 }
 0x1ed   :  { %v1210_v43 = vmul.f32 1.442695, %v1169_v61  ;;  %v1102_v48 = vpop.xlane.xlu1 %1101  ;;  %v1271_v49 = vsel %vm191_vm0, %v3448_v42, 0.0  ;;  %v3454_v51 = vpop.eup %2866 }
 0x1ee   :  { %v1172_v5 = vsub.f32 %v3342_v8, %v1102_v48  ;;  %1272 = vadd.xlane.f32.xlu1 %v1271_v49  ;;  %v1090_v1 = vpop.xlane.xlu0 %1089  ;;  %1257 = vadd.xlane.f32.xlu0 %v1256_v50  ;;  %v1268_v63 = vsel %vm191_vm0, %v3454_v51, 0.0 }
 0x1ef   :  { %2876 = vpow2.f32 %v1210_v43  ;;  %v1168_v6 = vsub.f32 %v3340_v7, %v1090_v1 }
 0x1f0   :  { %2878 = vpow2.f32 %v1218_v60  ;;  %v1216_v52 = vmul.f32 1.442695, %v1172_v5 }
 0x1f1   :  { %v3458_v57 = vpop.eup %2868  ;;  %v1208_v58 = vmul.f32 1.442695, %v1168_v6  ;;  %v1111_v62 = vpop.xlane.xlu1 %1110 }
 0x1f2   :  { %v3462_v0 = vpop.eup %2870  ;;  %v1175_v2 = vsub.f32 %v3348_v11, %v1111_v62  ;;  %1269 = vadd.xlane.f32.xlu1 %v1268_v63  ;;  %v1099_v8 = vpop.xlane.xlu0 %1098  ;;  %v1265_v3 = vsel %vm191_vm0, %v3458_v57, 0.0 }
 0x1f3   :  { %2880 = vpow2.f32 %v1208_v58  ;;  %v1171_v7 = vsub.f32 %v3350_v12, %v1099_v8  ;;  %1266 = vadd.xlane.f32.xlu0 %v1265_v3  ;;  %v1277_v16 = vsel %vm191_vm0, %v3462_v0, 0.0 }
 0x1f4   :  { %2882 = vpow2.f32 %v1216_v52  ;;  %v1222_v4 = vmul.f32 1.442695, %v1175_v2 }
 0x1f5   :  { %v3468_v9 = vpop.eup %2872  ;;  %v1214_v10 = vmul.f32 1.442695, %v1171_v7  ;;  %v1108_v15 = vpop.xlane.xlu1 %1107 }
 0x1f6   :  { %v3472_v17 = vpop.eup %2874  ;;  %v1174_v11 = vsub.f32 %v3354_v14, %v1108_v15  ;;  %1278 = vadd.xlane.f32.xlu1 %v1277_v16  ;;  %v1096_v18 = vpop.xlane.xlu0 %1095  ;;  %v1262_v53 = vsel %vm191_vm0, %v3468_v9, 0.0  ;;  %v159_v15 = vld [vmem:[#allocation9] sm:$0xff]  ;;  %v160_v16 = vld [vmem:[#allocation9 + $0x8] sm:$0xff] }
 0x1f7   :  { %2884 = vpow2.f32 %v1214_v10  ;;  %v1170_v12 = vsub.f32 %v3352_v13, %v1096_v18  ;;  %1263 = vadd.xlane.f32.xlu0 %v1262_v53  ;;  %v1274_v25 = vsel %vm191_vm0, %v3472_v17, 0.0  ;;  %v2786_v53 = vpack.c.bf16 %v160_v16, %v159_v15 }
 0x1f8   :  { %2886 = vpow2.f32 %v1222_v4  ;;  %v1220_v19 = vmul.f32 1.442695, %v1174_v11  ;;  %v161_v11 = vld [vmem:[#allocation9 + $0x10] sm:$0xff] }
 0x1f9   :  { %v3478_v55 = vpop.eup %2876  ;;  %v1212_v20 = vmul.f32 1.442695, %v1170_v12  ;;  %v162_v12 = vld [vmem:[#allocation9 + $0x18] sm:$0xff]  ;;  %2787 = vmatprep.subr.bf16.mxu0 %v2786_v53 }
 0x1fa   :  { %v3482_v27 = vpop.eup %2878  ;;  %2888 = vpow2.f32 %v1220_v19  ;;  %v1129_v14 = vpop.xlane.xlu1 %1128  ;;  %1275 = vadd.xlane.f32.xlu1 %v1274_v25  ;;  %v1283_v56 = vsel %vm191_vm0, %v3478_v55, 0.0  ;;  %v163_v19 = vld [vmem:[#allocation9 + $0x20] sm:$0xff]  ;;  %2789 = vmatpush3.bf16.msra.mxu0 %v2786_v53 }
 0x1fb   :  { %v1117_v54 = vpop.xlane.xlu0 %1116  ;;  %2890 = vpow2.f32 %v1212_v20  ;;  %v1181_v13 = vsub.f32 %v3368_v21, %v1129_v14  ;;  %1284 = vadd.xlane.f32.xlu0 %v1283_v56  ;;  %v1295_v36 = vsel %vm191_vm0, %v3482_v27, 0.0  ;;  %v164_v20 = vld [vmem:[#allocation9 + $0x28] sm:$0xff]  ;;  %v2790_v56 = vpack.c.bf16 %v162_v12, %v161_v11  ;;  %v167_v12 = vld [vmem:[#allocation9 + $0x40] sm:$0xff] }
 0x1fc   :  { %v1177_v33 = vsub.f32 %v3370_v22, %v1117_v54 }
 0x1fd   :  { %v3488_v34 = vpop.eup %2880  ;;  %v1234_v35 = vmul.f32 1.442695, %v1181_v13  ;;  %2791 = vmatprep.subr.bf16.mxu0 %v2790_v56 }
 0x1fe   :  { %v1226_v59 = vmul.f32 1.442695, %v1177_v33  ;;  %v3492_v37 = vpop.eup %2882  ;;  %v1126_v61 = vpop.xlane.xlu1 %1125  ;;  %1296 = vadd.xlane.f32.xlu1 %v1295_v36  ;;  %v1280_v43 = vsel %vm191_vm0, %v3488_v34, 0.0  ;;  %2793 = vmatpush3.bf16.msra.mxu0 %v2790_v56  ;;  %v172_v56 = vld [vmem:[#allocation9 + $0x68] sm:$0xff] }
 0x1ff   :  { %v1114_v60 = vpop.xlane.xlu0 %1113  ;;  %2892 = vpow2.f32 %v1234_v35  ;;  %v1180_v21 = vsub.f32 %v3374_v24, %v1126_v61  ;;  %1281 = vadd.xlane.f32.xlu0 %v1280_v43  ;;  %v1292_v5 = vsel %vm191_vm0, %v3492_v37, 0.0 }
 0x200   :  { %v1176_v22 = vsub.f32 %v3372_v23, %v1114_v60  ;;  %2894 = vpow2.f32 %v1226_v59 }
 0x201   :  { %v3498_v48 = vpop.eup %2884  ;;  %v1232_v49 = vmul.f32 1.442695, %v1180_v21 }
 0x202   :  { %v1224_v50 = vmul.f32 1.442695, %v1176_v22  ;;  %v3502_v1 = vpop.eup %2886  ;;  %v1135_v6 = vpop.xlane.xlu1 %1134  ;;  %1293 = vadd.xlane.f32.xlu1 %v1292_v5  ;;  %v1289_v58 = vsel %vm191_vm0, %v3498_v48, 0.0 }
 0x203   :  { %v1123_v52 = vpop.xlane.xlu0 %1122  ;;  %2896 = vpow2.f32 %v1232_v49  ;;  %v1183_v23 = vsub.f32 %v3380_v28, %v1135_v6  ;;  %1290 = vadd.xlane.f32.xlu0 %v1289_v58  ;;  %v1301_v3 = vsel %vm191_vm0, %v3502_v1, 0.0  ;;  %v165_v6 = vld [vmem:[#allocation9 + $0x30] sm:$0xff] }
 0x204   :  { %v1179_v24 = vsub.f32 %v3382_v29, %v1123_v52  ;;  %v3508_v62 = vpop.eup %2888  ;;  %2898 = vpow2.f32 %v1224_v50  ;;  %v166_v52 = vld [vmem:[#allocation9 + $0x38] sm:$0xff] }
 0x205   :  { %v3510_v63 = vpop.eup %2890  ;;  %v1238_v2 = vmul.f32 1.442695, %v1183_v23  ;;  %v1298_v18 = vsel %vm191_vm0, %v3508_v62, 0.0 }
 0x206   :  { %v1230_v8 = vmul.f32 1.442695, %v1179_v24  ;;  %v1132_v7 = vpop.xlane.xlu1 %1131  ;;  %1302 = vadd.xlane.f32.xlu1 %v1301_v3  ;;  %v1286_v10 = vsel %vm191_vm0, %v3510_v63, 0.0  ;;  %v2798_v24 = vpack.c.bf16 %v166_v52, %v165_v6 }
 0x207   :  { %v1120_v4 = vpop.xlane.xlu0 %1119  ;;  %2900 = vpow2.f32 %v1238_v2  ;;  %v1182_v28 = vsub.f32 %v3386_v31, %v1132_v7  ;;  %1287 = vadd.xlane.f32.xlu0 %v1286_v10  ;;  %v2794_v31 = vpack.c.bf16 %v164_v20, %v163_v19  ;;  %v171_v19 = vld [vmem:[#allocation9 + $0x60] sm:$0xff] }
 0x208   :  { %v1178_v29 = vsub.f32 %v3384_v30, %v1120_v4  ;;  %2902 = vpow2.f32 %v1230_v8 }
 0x209   :  { %v3520_v25 = vpop.eup %2892  ;;  %v1236_v14 = vmul.f32 1.442695, %v1182_v28  ;;  %2795 = vmatprep.subr.bf16.mxu1 %v2794_v31 }
 0x20a   :  { %v1228_v54 = vmul.f32 1.442695, %v1178_v29  ;;  %v3522_v13 = vpop.eup %2894  ;;  %1299 = vadd.xlane.f32.xlu1 %v1298_v18  ;;  %v1319_v60 = vsel %vm191_vm0, %v3520_v25, 0.0  ;;  %2797 = vmatpush3.bf16.msra.mxu1 %v2794_v31 }
 0x20b   :  { %2904 = vpow2.f32 %v1236_v14  ;;  %v1153_v30 = vpop.xlane.xlu1 %1152  ;;  %v1141_v33 = vpop.xlane.xlu0 %1140  ;;  %v1307_v35 = vsel %vm191_vm0, %v3522_v13, 0.0  ;;  %2799 = vmatprep.subr.bf16.mxu1 %v2798_v24 }
 0x20c   :  { %2906 = vpow2.f32 %v1228_v54  ;;  %v1189_v59 = vsub.f32 %v3400_v38, %v1153_v30  ;;  %v1185_v36 = vsub.f32 %v3402_v39, %v1141_v33  ;;  %1308 = vadd.xlane.f32.xlu0 %v1307_v35  ;;  %v3562_v30 = vpack.c.bf16 %v172_v56, %v171_v19  ;;  %v174_v56 = vld [vmem:[#allocation9 + $0x78] sm:$0xff] }
 0x20d   :  { %v3528_v61 = vpop.eup %2896 }
 0x20e   :  { %v3532_v43 = vpop.eup %2898  ;;  %v1250_v21 = vmul.f32 1.442695, %v1189_v59  ;;  %v1242_v22 = vmul.f32 1.442695, %v1185_v36  ;;  %1320 = vadd.xlane.f32.xlu1 %v1319_v60  ;;  %v1316_v23 = vsel %vm191_vm0, %v3528_v61, 0.0  ;;  %2801 = vmatpush3.bf16.msra.mxu1 %v2798_v24 }
 0x20f   :  { %v1150_v49 = vpop.xlane.xlu1 %1149  ;;  %v1138_v50 = vpop.xlane.xlu0 %1137  ;;  %v1304_v38 = vsel %vm191_vm0, %v3532_v43, 0.0  ;;  %2811 = vmatprep.subr.bf16.mxu1 %v3562_v30 }
 0x210   :  { %2908 = vpow2.f32 %v1250_v21  ;;  %v1188_v39 = vsub.f32 %v3406_v41, %v1150_v49  ;;  %v1184_v5 = vsub.f32 %v3404_v40, %v1138_v50  ;;  %1305 = vadd.xlane.f32.xlu0 %v1304_v38 }
 0x211   :  { %v3538_v58 = vpop.eup %2900  ;;  %2910 = vpow2.f32 %v1242_v22 }
 0x212   :  { %v3542_v2 = vpop.eup %2902  ;;  %v1248_v8 = vmul.f32 1.442695, %v1188_v39  ;;  %v1240_v3 = vmul.f32 1.442695, %v1184_v5  ;;  %1317 = vadd.xlane.f32.xlu1 %v1316_v23  ;;  %v1325_v29 = vsel %vm191_vm0, %v3538_v58, 0.0 }
 0x213   :  { %v1156_v7 = vpop.xlane.xlu1 %1155  ;;  %v1144_v4 = vpop.xlane.xlu0 %1143  ;;  %v1313_v40 = vsel %vm191_vm0, %v3542_v2, 0.0 }
 0x214   :  { %2912 = vpow2.f32 %v1248_v8  ;;  %v1190_v41 = vsub.f32 %v3418_v47, %v1156_v7  ;;  %v1186_v10 = vsub.f32 %v3416_v46, %v1144_v4  ;;  %1314 = vadd.xlane.f32.xlu0 %v1313_v40  ;;  %v168_v46 = vld [vmem:[#allocation9 + $0x48] sm:$0xff] }
 0x215   :  { %v3548_v28 = vpop.eup %2904  ;;  %2914 = vpow2.f32 %v1240_v3  ;;  %v3558_v54 = vpack.c.bf16 %v168_v46, %v167_v12 }
 0x216   :  { %v3552_v15 = vpop.eup %2906  ;;  %v1252_v16 = vmul.f32 1.442695, %v1190_v41  ;;  %v1244_v11 = vmul.f32 1.442695, %v1186_v10  ;;  %1326 = vadd.xlane.f32.xlu1 %v1325_v29  ;;  %v1322_v31 = vsel %vm191_vm0, %v3548_v28, 0.0 }
 0x217   :  { %v1159_v18 = vpop.xlane.xlu1 %1158  ;;  %v1147_v53 = vpop.xlane.xlu0 %1146  ;;  %v1310_v47 = vsel %vm191_vm0, %v3552_v15, 0.0  ;;  %2803 = vmatprep.subr.bf16.mxu0 %v3558_v54 }
 0x218   :  { %2916 = vpow2.f32 %v1252_v16  ;;  %v1191_v20 = vsub.f32 %v3412_v44, %v1159_v18  ;;  %v1187_v14 = vsub.f32 %v3414_v45, %v1147_v53  ;;  %1311 = vadd.xlane.f32.xlu0 %v1310_v47  ;;  %v169_v16 = vld [vmem:[#allocation9 + $0x50] sm:$0xff] }
 0x219   :  { %2918 = vpow2.f32 %v1244_v11  ;;  %v170_v11 = vld [vmem:[#allocation9 + $0x58] sm:$0xff] }
 0x21a   :  { %v3564_v33 = vpop.eup %2908  ;;  %v1254_v35 = vmul.f32 1.442695, %v1191_v20  ;;  %v1246_v59 = vmul.f32 1.442695, %v1187_v14  ;;  %1323 = vadd.xlane.f32.xlu1 %v1322_v31  ;;  %v2806_v20 = vpack.c.bf16 %v170_v11, %v169_v16  ;;  %v173_v14 = vld [vmem:[#allocation9 + $0x70] sm:$0xff] }
 0x21b   :  { %v3567_v44 = vpop.eup %2910  ;;  %v1343_v36 = vsel %vm191_vm0, %v3564_v33, 0.0 }
 0x21c   :  { %2920 = vpow2.f32 %v1254_v35  ;;  %v1331_v45 = vsel %vm191_vm0, %v3567_v44, 0.0  ;;  %v175_v35 = vld [vmem:[#allocation9 + $0x80] sm:$0xff] }
 0x21d   :  { %2922 = vpow2.f32 %v1246_v59  ;;  %1332 = vadd.xlane.f32.xlu0 %v1331_v45  ;;  %v176_v59 = vld [vmem:[#allocation9 + $0x88] sm:$0xff] }
 0x21e   :  { %v3574_v60 = vpop.eup %2912  ;;  %1344 = vadd.xlane.f32.xlu1 %v1343_v36 }
 0x21f   :  { %v3576_v21 = vpop.eup %2914  ;;  %v1340_v49 = vsel %vm191_vm0, %v3574_v60, 0.0 }
 0x220   :  { %v1328_v22 = vsel %vm191_vm0, %v3576_v21, 0.0 }
 0x221   :  { %1329 = vadd.xlane.f32.xlu0 %v1328_v22 }
 0x222   :  { %v3582_v50 = vpop.eup %2916  ;;  %1341 = vadd.xlane.f32.xlu1 %v1340_v49  ;;  %v2818_v49 = vpack.c.bf16 %v176_v59, %v175_v35 }
 0x223   :  { %v3584_v38 = vpop.eup %2918  ;;  %v1346_v5 = vsel %vm191_vm0, %v3582_v50, 0.0 }
 0x224   :  { %v1334_v39 = vsel %vm191_vm0, %v3584_v38, 0.0 }
 0x225   :  { %1335 = vadd.xlane.f32.xlu0 %v1334_v39  ;;  %v179_v39 = vld [vmem:[#allocation9 + $0xa0] sm:$0xff] }
 0x226   :  { %v3590_v6 = vpop.eup %2920  ;;  %1347 = vadd.xlane.f32.xlu1 %v1346_v5  ;;  %v180_v5 = vld [vmem:[#allocation9 + $0xa8] sm:$0xff] }
 0x227   :  { %v3592_v52 = vpop.eup %2922  ;;  %v1349_v24 = vsel %vm191_vm0, %v3590_v6, 0.0 }
 0x228   :  { %v1337_v23 = vsel %vm191_vm0, %v3592_v52, 0.0 }
 0x229   :  { %1338 = vadd.xlane.f32.xlu0 %v1337_v23 }
 0x22a   :  { %1350 = vadd.xlane.f32.xlu1 %v1349_v24 }
 0x277   :  { %v1261_v8 = vpop.xlane.xlu0 %1260 }
 0x278   :  { %2924 = vrcp.f32 %v1261_v8  ;;  %v2826_v8 = vpack.c.bf16 %v180_v5, %v179_v39 }
 0x27b   :  { %v1273_v3 = vpop.xlane.xlu1 %1272  ;;  %v1258_v7 = vpop.xlane.xlu0 %1257 }
 0x27c   :  { %2926 = vrcp.f32 %v1258_v7 }
 0x27d   :  { %2928 = vrcp.f32 %v1273_v3 }
 0x27f   :  { %v1270_v4 = vpop.xlane.xlu1 %1269 }
 0x280   :  { %2930 = vrcp.f32 %v1270_v4  ;;  %v1267_v40 = vpop.xlane.xlu0 %1266 }
 0x281   :  { %2932 = vrcp.f32 %v1267_v40 }
 0x282   :  { %v2925_v29 = vpop.eup %2924 }
 0x283   :  { %v1279_v41 = vpop.xlane.xlu1 %1278  ;;  %v1355_v19 = vmul.f32 %v2925_v29, %v3440_v32  ;;  %v2814_v32 = vpack.c.bf16 %v174_v56, %v173_v14  ;;  %v178_v29 = vld [vmem:[#allocation9 + $0x98] sm:$0xff]  ;;  %v184_v14 = vld [vmem:[#allocation9 + $0xc8] sm:$0xff] }
 0x284   :  { %v1264_v10 = vpop.xlane.xlu0 %1263 }
 0x285   :  { %2934 = vrcp.f32 %v1264_v10 }
 0x286   :  { %v2927_v18 = vpop.eup %2926  ;;  %2936 = vrcp.f32 %v1279_v41 }
 0x287   :  { %v1276_v53 = vpop.xlane.xlu1 %1275  ;;  %v1353_v12 = vmul.f32 %v2927_v18, %v3444_v26  ;;  %v2929_v46 = vpop.eup %2928 }
 0x288   :  { %2938 = vrcp.f32 %v1276_v53  ;;  %v1285_v47 = vpop.xlane.xlu0 %1284  ;;  %v1363_v22 = vmul.f32 %v2929_v46, %v3448_v42  ;;  %v182_v46 = vld [vmem:[#allocation9 + $0xb8] sm:$0xff] }
 0x289   :  { %2586 = vmatprep.mubr.msk.f32.mxu0 %vm191_vm0, %v1353_v12  ;;  %2940 = vrcp.f32 %v1285_v47  ;;  %v181_v12 = vld [vmem:[#allocation9 + $0xb0] sm:$0xff] }
 0x28a   :  { %v2931_v31 = vpop.eup %2930  ;;  %2587 = vmatmul.mubr.msk.f32.vlgmr.msra.gmra.mrb[16].mxu0 %vm191_vm0, %v1355_v19 }
 0x28b   :  { %v1297_v45 = vpop.xlane.xlu1 %1296  ;;  %v1361_v36 = vmul.f32 %v2931_v31, %v3454_v51  ;;  %2805 = vmatpush3.bf16.msra.mxu0 %v3558_v54  ;;  %v2933_v23 = vpop.eup %2932 }
 0x28c   :  { %v1282_v26 = vpop.xlane.xlu0 %1281  ;;  %2807 = vmatprep.subr.bf16.mxu0 %v2806_v20  ;;  %v1359_v7 = vmul.f32 %v2933_v23, %v3458_v57  ;;  %v177_v57 = vld [vmem:[#allocation9 + $0x90] sm:$0xff] }
 0x28d   :  { %2942 = vrcp.f32 %v1282_v26  ;;  %2600 = vmatprep.mubr.msk.f32.mxu1 %vm191_vm0, %v1361_v36  ;;  %v188_v36 = vld [vmem:[#allocation9 + $0xe8] sm:$0xff] }
 0x28e   :  { %2601 = vmatmul.mubr.msk.f32.vlgmr.msra.gmra.mrb[16].mxu1 %vm191_vm0, %v1363_v22  ;;  %2944 = vrcp.f32 %v1297_v45  ;;  %v187_v45 = vld [vmem:[#allocation9 + $0xe0] sm:$0xff] }
 0x28f   :  { %v2935_v24 = vpop.eup %2934  ;;  %v1294_v51 = vpop.xlane.xlu1 %1293  ;;  %2813 = vmatpush3.bf16.msra.mxu1 %v3562_v30  ;;  %2809 = vmatpush3.bf16.msra.mxu0 %v2806_v20  ;;  %v183_v20 = vld [vmem:[#allocation9 + $0xc0] sm:$0xff] }
 0x290   :  { %2946 = vrcp.f32 %v1294_v51  ;;  %v1291_v42 = vpop.xlane.xlu0 %1290  ;;  %v1357_v54 = vmul.f32 %v2935_v24, %v3468_v9  ;;  %2815 = vmatprep.subr.bf16.mxu1 %v2814_v32  ;;  %v2937_v3 = vpop.eup %2936  ;;  %2819 = vmatprep.subr.bf16.mxu0 %v2818_v49  ;;  %v2834_v59 = vpack.c.bf16 %v184_v14, %v183_v20 }
 0x291   :  { %2948 = vrcp.f32 %v1291_v42  ;;  %v1367_v9 = vmul.f32 %v2937_v3, %v3462_v0  ;;  %v2822_v0 = vpack.c.bf16 %v178_v29, %v177_v57  ;;  %v186_v3 = vld [vmem:[#allocation9 + $0xd8] sm:$0xff] }
 0x292   :  { %v2939_v4 = vpop.eup %2938  ;;  %2589 = vmatprep.mubr.msk.f32.mxu0 %vm191_vm0, %v1357_v54 }
 0x293   :  { %v1303_v40 = vpop.xlane.xlu1 %1302  ;;  %2590 = vmatmul.mubr.msk.f32.gmra.mrb[18].mxu0 %vm191_vm0, %v1359_v7  ;;  %v1365_v41 = vmul.f32 %v2939_v4, %v3472_v17  ;;  %2817 = vmatpush3.bf16.msra.mxu1 %v2814_v32  ;;  %v2941_v10 = vpop.eup %2940 }
 0x294   :  { %v1288_v30 = vpop.xlane.xlu0 %1287  ;;  %2827 = vmatprep.subr.bf16.mxu1 %v2826_v8  ;;  %v1371_v53 = vmul.f32 %v2941_v10, %v3478_v55 }
 0x295   :  { %2950 = vrcp.f32 %v1288_v30  ;;  %2603 = vmatprep.mubr.msk.f32.mxu1 %vm191_vm0, %v1365_v41 }
 0x296   :  { %2604 = vmatmul.mubr.msk.f32.gmra.mrb[18].mxu1 %vm191_vm0, %v1367_v9  ;;  %2952 = vrcp.f32 %v1303_v40  ;;  %v189_v40 = vld [vmem:[#allocation9 + $0xf0] sm:$0xff] }
 0x297   :  { %v2943_v16 = vpop.eup %2942  ;;  %v1300_v11 = vpop.xlane.xlu1 %1299 }
 0x298   :  { %2954 = vrcp.f32 %v1300_v11  ;;  %v1369_v17 = vmul.f32 %v2943_v16, %v3488_v34  ;;  %v2945_v18 = vpop.eup %2944  ;;  %v2830_v34 = vpack.c.bf16 %v182_v46, %v181_v12 }
 0x299   :  { %v1309_v47 = vpop.xlane.xlu0 %1308  ;;  %v1379_v35 = vmul.f32 %v2945_v18, %v3482_v27 }
 0x29a   :  { %v2947_v19 = vpop.eup %2946  ;;  %2614 = vmatprep.mubr.msk.f32.mxu0 %vm191_vm0, %v1369_v17  ;;  %2956 = vrcp.f32 %v1309_v47 }
 0x29b   :  { %v1321_v56 = vpop.xlane.xlu1 %1320  ;;  %2615 = vmatmul.mubr.msk.f32.vlgmr.msra.gmra.mrb[20].mxu0 %vm191_vm0, %v1371_v53  ;;  %v1377_v31 = vmul.f32 %v2947_v19, %v3492_v37  ;;  %v2949_v22 = vpop.eup %2948  ;;  %v2842_v37 = vpack.c.bf16 %v188_v36, %v187_v45 }
 0x29c   :  { %2821 = vmatpush3.bf16.msra.mxu0 %v2818_v49  ;;  %v1375_v5 = vmul.f32 %v2949_v22, %v3498_v48 }
 0x29d   :  { %v1306_v55 = vpop.xlane.xlu0 %1305  ;;  %2628 = vmatprep.mubr.msk.f32.mxu1 %vm191_vm0, %v1377_v31  ;;  %2823 = vmatprep.subr.bf16.mxu0 %v2822_v0 }
 0x29e   :  { %2958 = vrcp.f32 %v1306_v55  ;;  %2629 = vmatmul.mubr.msk.f32.vlgmr.msra.gmra.mrb[20].mxu1 %vm191_vm0, %v1379_v35 }
 0x29f   :  { %v2951_v26 = vpop.eup %2950  ;;  %2960 = vrcp.f32 %v1321_v56  ;;  %v1318_v32 = vpop.xlane.xlu1 %1317  ;;  %2829 = vmatpush3.bf16.msra.mxu1 %v2826_v8  ;;  %v185_v8 = vld [vmem:[#allocation9 + $0xd0] sm:$0xff] }
 0x2a0   :  { %2962 = vrcp.f32 %v1318_v32  ;;  %v1373_v27 = vmul.f32 %v2951_v26, %v3510_v63  ;;  %2825 = vmatpush3.bf16.msra.mxu0 %v2822_v0  ;;  %2831 = vmatprep.subr.bf16.mxu1 %v2830_v34  ;;  %v2953_v49 = vpop.eup %2952  ;;  %v2838_v10 = vpack.c.bf16 %v186_v3, %v185_v8 }
 0x2a1   :  { %v1315_v39 = vpop.xlane.xlu0 %1314  ;;  %2835 = vmatprep.subr.bf16.mxu0 %v2834_v59  ;;  %v1383_v42 = vmul.f32 %v2953_v49, %v3502_v1  ;;  %v190_v1 = vld [vmem:[#allocation9 + $0xf8] sm:$0xff] }
 0x2a2   :  { %v2955_v23 = vpop.eup %2954  ;;  %2617 = vmatprep.mubr.msk.f32.mxu0 %vm191_vm0, %v1373_v27  ;;  %2964 = vrcp.f32 %v1315_v39  ;;  %v2846_v11 = vpack.c.bf16 %v190_v1, %v189_v40 }
 0x2a3   :  { %v1327_v24 = vpop.xlane.xlu1 %1326  ;;  %2618 = vmatmul.mubr.msk.f32.gmra.mrb[22].mxu0 %vm191_vm0, %v1375_v5  ;;  %v1381_v51 = vmul.f32 %v2955_v23, %v3508_v62  ;;  %2833 = vmatpush3.bf16.msra.mxu1 %v2830_v34 }
 0x2a4   :  { %2843 = vmatprep.subr.bf16.mxu1 %v2842_v37  ;;  %v2957_v48 = vpop.eup %2956 }
 0x2a5   :  { %v1312_v63 = vpop.xlane.xlu0 %1311  ;;  %2631 = vmatprep.mubr.msk.f32.mxu1 %vm191_vm0, %v1381_v51  ;;  %v1387_v30 = vmul.f32 %v2957_v48, %v3522_v13 }
 0x2a6   :  { %2966 = vrcp.f32 %v1312_v63  ;;  %2632 = vmatmul.mubr.msk.f32.gmra.mrb[22].mxu1 %vm191_vm0, %v1383_v42 }
 0x2a7   :  { %2968 = vrcp.f32 %v1327_v24  ;;  %v1324_v54 = vpop.xlane.xlu1 %1323 }
 0x2a8   :  { %v2959_v7 = vpop.eup %2958  ;;  %2970 = vrcp.f32 %v1324_v54 }
 0x2a9   :  { %v2961_v4 = vpop.eup %2960  ;;  %v1385_v62 = vmul.f32 %v2959_v7, %v3532_v43 }
 0x2aa   :  { %v2963_v41 = vpop.eup %2962  ;;  %v1333_v9 = vpop.xlane.xlu0 %1332  ;;  %v1395_v16 = vmul.f32 %v2961_v4, %v3520_v25 }
 0x2ab   :  { %2642 = vmatprep.mubr.msk.f32.mxu0 %vm191_vm0, %v1385_v62  ;;  %v1345_v57 = vpop.xlane.xlu1 %1344  ;;  %v1393_v29 = vmul.f32 %v2963_v41, %v3528_v61  ;;  %2972 = vrcp.f32 %v1333_v9 }
 0x2ac   :  { %2643 = vmatmul.mubr.msk.f32.vlgmr.msra.gmra.mrb[24].mxu0 %vm191_vm0, %v1387_v30  ;;  %2974 = vrcp.f32 %v1345_v57  ;;  %v2965_v13 = vpop.eup %2964 }
 0x2ad   :  { %2656 = vmatprep.mubr.msk.f32.mxu1 %vm191_vm0, %v1393_v29  ;;  %2837 = vmatpush3.bf16.msra.mxu0 %v2834_v59  ;;  %v1391_v0 = vmul.f32 %v2965_v13, %v3542_v2 }
 0x2ae   :  { %v1330_v43 = vpop.xlane.xlu0 %1329  ;;  %2657 = vmatmul.mubr.msk.f32.vlgmr.msra.gmra.mrb[24].mxu1 %vm191_vm0, %v1395_v16  ;;  %2839 = vmatprep.subr.bf16.mxu0 %v2838_v10 }
 0x2af   :  { %2976 = vrcp.f32 %v1330_v43  ;;  %v1342_v17 = vpop.xlane.xlu1 %1341  ;;  %2845 = vmatpush3.bf16.msra.mxu1 %v2842_v37 }
 0x2b0   :  { %v2967_v18 = vpop.eup %2966  ;;  %2978 = vrcp.f32 %v1342_v17  ;;  %2847 = vmatprep.subr.bf16.mxu1 %v2846_v11 }
 0x2b1   :  { %v2969_v25 = vpop.eup %2968  ;;  %v1389_v61 = vmul.f32 %v2967_v18, %v3552_v15  ;;  %2841 = vmatpush3.bf16.msra.mxu0 %v2838_v10 }
 0x2b2   :  { %v2971_v53 = vpop.eup %2970  ;;  %v1336_v47 = vpop.xlane.xlu0 %1335  ;;  %v1399_v19 = vmul.f32 %v2969_v25, %v3538_v58 }
 0x2b3   :  { %2980 = vrcp.f32 %v1336_v47  ;;  %2645 = vmatprep.mubr.msk.f32.mxu0 %vm191_vm0, %v1389_v61  ;;  %v1348_v12 = vpop.xlane.xlu1 %1347  ;;  %v1397_v46 = vmul.f32 %v2971_v53, %v3548_v28  ;;  %2849 = vmatpush3.bf16.msra.mxu1 %v2846_v11 }
 0x2b4   :  { %2982 = vrcp.f32 %v1348_v12  ;;  %2646 = vmatmul.mubr.msk.f32.gmra.mrb[26].mxu0 %vm191_vm0, %v1391_v0 }
 0x2b5   :  { %2659 = vmatprep.mubr.msk.f32.mxu1 %vm191_vm0, %v1397_v46  ;;  %v2973_v20 = vpop.eup %2972 }
 0x2b6   :  { %v1339_v15 = vpop.xlane.xlu0 %1338  ;;  %2660 = vmatmul.mubr.msk.f32.gmra.mrb[26].mxu1 %vm191_vm0, %v1399_v19  ;;  %v2975_v14 = vpop.eup %2974  ;;  %v1403_v35 = vmul.f32 %v2973_v20, %v3567_v44 }
 0x2b7   :  { %2984 = vrcp.f32 %v1339_v15  ;;  %v1351_v2 = vpop.xlane.xlu1 %1350  ;;  %v1411_v58 = vmul.f32 %v2975_v14, %v3564_v33 }
 0x2b8   :  { %2986 = vrcp.f32 %v1351_v2 }
 0x2b9   :  { %v2977_v56 = vpop.eup %2976 }
 0x2ba   :  { %v2979_v31 = vpop.eup %2978  ;;  %v1401_v28 = vmul.f32 %v2977_v56, %v3576_v21 }
 0x2bb   :  { %v1409_v34 = vmul.f32 %v2979_v31, %v3574_v60 }
 0x2bc   :  { %2670 = vmatprep.mubr.msk.f32.mxu0 %vm191_vm0, %v1401_v28 }
 0x2bd   :  { %v2981_v55 = vpop.eup %2980  ;;  %2671 = vmatmul.mubr.msk.f32.vlgmr.msra.gmra.mrb[28].mxu0 %vm191_vm0, %v1403_v35  ;;  %2684 = vmatprep.mubr.msk.f32.mxu1 %vm191_vm0, %v1409_v34 }
 0x2be   :  { %v2983_v59 = vpop.eup %2982  ;;  %v1405_v45 = vmul.f32 %v2981_v55, %v3584_v38  ;;  %2685 = vmatmul.mubr.msk.f32.vlgmr.msra.gmra.mrb[28].mxu1 %vm191_vm0, %v1411_v58 }
 0x2bf   :  { %v1413_v21 = vmul.f32 %v2983_v59, %v3582_v50 }
 0x2c0   :  { %2673 = vmatprep.mubr.msk.f32.mxu0 %vm191_vm0, %v1405_v45 }
 0x2c1   :  { %v2985_v44 = vpop.eup %2984  ;;  %2687 = vmatprep.mubr.msk.f32.mxu1 %vm191_vm0, %v1413_v21 }
 0x2c2   :  { %v2987_v33 = vpop.eup %2986  ;;  %v1407_v60 = vmul.f32 %v2985_v44, %v3592_v52 }
 0x2c3   :  { %v1415_v36 = vmul.f32 %v2987_v33, %v3590_v6 }
 0x2c4   :  { %2674 = vmatmul.mubr.msk.f32.gmra.mrb[30].mxu0 %vm191_vm0, %v1407_v60 }
 0x2c5   :  { %2688 = vmatmul.mubr.msk.f32.gmra.mrb[30].mxu1 %vm191_vm0, %v1415_v36 }
 0x35d   :  { %v2588_v22 = vpop.f32.mrb[16].mxu0 }
 0x35e   :  { %2193 = vst.msk [vmem:[#allocation10 + $0x8] sm:$0xff] %vm191_vm0, %v2588_v22  ;;  %v1494_v38 = vpop.f32.mrb[17].mxu0 }
 0x35f   :  { %2192 = vst.msk [vmem:[#allocation10] sm:$0xff] %vm191_vm0, %v1494_v38 }
 0x361   :  { %v2602_v50 = vpop.f32.mrb[16].mxu1 }
 0x362   :  { %2197 = vst.msk [vmem:[#allocation10 + $0x28] sm:$0xff] %vm191_vm0, %v2602_v50  ;;  %v1591_v26 = vpop.f32.mrb[17].mxu1 }
 0x363   :  { %2196 = vst.msk [vmem:[#allocation10 + $0x20] sm:$0xff] %vm191_vm0, %v1591_v26 }
 0x366   :  { %v2591_v32 = vpop.f32.mrb[18].mxu0 }
 0x367   :  { %2195 = vst.msk [vmem:[#allocation10 + $0x18] sm:$0xff] %vm191_vm0, %v2591_v32  ;;  %v1504_v6 = vpop.f32.mrb[19].mxu0 }
 0x368   :  { %2194 = vst.msk [vmem:[#allocation10 + $0x10] sm:$0xff] %vm191_vm0, %v1504_v6 }
 0x369   :  { %v2605_v52 = vpop.f32.mrb[18].mxu1 }
 0x36a   :  { %2199 = vst.msk [vmem:[#allocation10 + $0x38] sm:$0xff] %vm191_vm0, %v2605_v52  ;;  %v1601_v27 = vpop.f32.mrb[19].mxu1 }
 0x36b   :  { %2198 = vst.msk [vmem:[#allocation10 + $0x30] sm:$0xff] %vm191_vm0, %v1601_v27 }
 0x36e   :  { %v2616_v37 = vpop.f32.mrb[20].mxu0 }
 0x36f   :  { %2201 = vst.msk [vmem:[#allocation10 + $0x48] sm:$0xff] %vm191_vm0, %v2616_v37  ;;  %v1688_v49 = vpop.f32.mrb[21].mxu0 }
 0x370   :  { %2200 = vst.msk [vmem:[#allocation10 + $0x40] sm:$0xff] %vm191_vm0, %v1688_v49 }
 0x371   :  { %v2630_v39 = vpop.f32.mrb[20].mxu1 }
 0x372   :  { %2205 = vst.msk [vmem:[#allocation10 + $0x68] sm:$0xff] %vm191_vm0, %v2630_v39  ;;  %v1785_v5 = vpop.f32.mrb[21].mxu1 }
 0x373   :  { %2204 = vst.msk [vmem:[#allocation10 + $0x60] sm:$0xff] %vm191_vm0, %v1785_v5 }
 0x376   :  { %v2619_v23 = vpop.f32.mrb[22].mxu0 }
 0x377   :  { %2203 = vst.msk [vmem:[#allocation10 + $0x58] sm:$0xff] %vm191_vm0, %v2619_v23  ;;  %v1698_v24 = vpop.f32.mrb[23].mxu0 }
 0x378   :  { %2202 = vst.msk [vmem:[#allocation10 + $0x50] sm:$0xff] %vm191_vm0, %v1698_v24 }
 0x379   :  { %v2633_v51 = vpop.f32.mrb[22].mxu1 }
 0x37a   :  { %2207 = vst.msk [vmem:[#allocation10 + $0x78] sm:$0xff] %vm191_vm0, %v2633_v51  ;;  %v1795_v42 = vpop.f32.mrb[23].mxu1 }
 0x37b   :  { %2206 = vst.msk [vmem:[#allocation10 + $0x70] sm:$0xff] %vm191_vm0, %v1795_v42 }
 0x37f   :  { %v2644_v63 = vpop.f32.mrb[24].mxu0 }
 0x380   :  { %2209 = vst.msk [vmem:[#allocation10 + $0x88] sm:$0xff] %vm191_vm0, %v2644_v63  ;;  %v1882_v48 = vpop.f32.mrb[25].mxu0 }
 0x381   :  { %2208 = vst.msk [vmem:[#allocation10 + $0x80] sm:$0xff] %vm191_vm0, %v1882_v48  ;;  %v2658_v54 = vpop.f32.mrb[24].mxu1 }
 0x382   :  { %2213 = vst.msk [vmem:[#allocation10 + $0xa8] sm:$0xff] %vm191_vm0, %v2658_v54  ;;  %v1979_v8 = vpop.f32.mrb[25].mxu1 }
 0x383   :  { %2212 = vst.msk [vmem:[#allocation10 + $0xa0] sm:$0xff] %vm191_vm0, %v1979_v8 }
 0x387   :  { %v2647_v3 = vpop.f32.mrb[26].mxu0 }
 0x388   :  { %2211 = vst.msk [vmem:[#allocation10 + $0x98] sm:$0xff] %vm191_vm0, %v2647_v3  ;;  %v1892_v7 = vpop.f32.mrb[27].mxu0 }
 0x389   :  { %2210 = vst.msk [vmem:[#allocation10 + $0x90] sm:$0xff] %vm191_vm0, %v1892_v7  ;;  %v2661_v4 = vpop.f32.mrb[26].mxu1 }
 0x38a   :  { %2215 = vst.msk [vmem:[#allocation10 + $0xb8] sm:$0xff] %vm191_vm0, %v2661_v4  ;;  %v1989_v62 = vpop.f32.mrb[27].mxu1 }
 0x38b   :  { %2214 = vst.msk [vmem:[#allocation10 + $0xb0] sm:$0xff] %vm191_vm0, %v1989_v62 }
 0x390   :  { %v2672_v40 = vpop.f32.mrb[28].mxu0 }
 0x391   :  { %2217 = vst.msk [vmem:[#allocation10 + $0xc8] sm:$0xff] %vm191_vm0, %v2672_v40  ;;  %v2076_v1 = vpop.f32.mrb[29].mxu0  ;;  %v2686_v41 = vpop.f32.mrb[28].mxu1 }
 0x392   :  { %2216 = vst.msk [vmem:[#allocation10 + $0xc0] sm:$0xff] %vm191_vm0, %v2076_v1  ;;  %2221 = vst.msk [vmem:[#allocation10 + $0xe8] sm:$0xff] %vm191_vm0, %v2686_v41  ;;  %v2173_v30 = vpop.f32.mrb[29].mxu1 }
 0x393   :  { %2220 = vst.msk [vmem:[#allocation10 + $0xe0] sm:$0xff] %vm191_vm0, %v2173_v30 }
 0x397   :  { %v2675_v9 = vpop.f32.mrb[30].mxu0 }
 0x398   :  { %2219 = vst.msk [vmem:[#allocation10 + $0xd8] sm:$0xff] %vm191_vm0, %v2675_v9  ;;  %v2086_v10 = vpop.f32.mrb[31].mxu0  ;;  %v2689_v57 = vpop.f32.mrb[30].mxu1 }
 0x399   :  { %2218 = vst.msk [vmem:[#allocation10 + $0xd0] sm:$0xff] %vm191_vm0, %v2086_v10  ;;  %2223 = vst.msk [vmem:[#allocation10 + $0xf8] sm:$0xff] %vm191_vm0, %v2689_v57  ;;  %v2183_v29 = vpop.f32.mrb[31].mxu1 }
 0x39a   :  { %2222 = vst.msk [vmem:[#allocation10 + $0xf0] sm:$0xff] %vm191_vm0, %v2183_v29 }
 0x39b   :  { %3065 = shalt.err (!%p3062_p0)
}
 0x39c   :  { %s3066_s7 = scalar_lea.hbm %s3715_s4, 4096 }
 0x39d   :  { %p3067_p1 = scmp.ne.s32.totalorder %s3715_s4, %s3066_s7  ;;  %p3070_p2 = scmp.lt.u32.totalorder %s3066_s7, %s3715_s4 }
 0x39f   :  { %p3072_p3 = pnand %p3070_p2, %p3067_p1 }
 0x3a1   :  { %3075 = shalt.err (!%p3072_p3)
}
 0x3a2   :  { %2235 = dma.vmem_to_hbm [thread:$0]  %s2230_s29, 4096, %s3715_s4, [#allocation6], %s3084_s27, %s3084_s27, %s3085_s28  }
 0x3a3   :  { %3080 = dma.done.wait [#allocation6], 4096  }
 0x3a4   :  { %3081 = vsyncadd [#allocation6], 4294963200 }
 0x3a5   :  { %2239 = vsyncpa [#allocation5], 1 }
 0x3a6   :  { %2240 = vsyncpa [#allocation8], 1 }
 0x3a7   :  { %2241 = vsyncpa [#allocation6], 1 }

</bundles_post_ra>
